<compile_context>
chip_gen: v5e
topology: v5e:2x2
jax: 0.10.0
libtpu: 0.0.40
codegen_flags: <defaults>
</compile_context>

<pallas_src>
import functools
import math

import jax
import jax.numpy as jnp
from jax import lax
from jax.experimental import pallas as pl
from jax.experimental.pallas import tpu as pltpu


_ISSUE_UNROLL = 8                      # DMA issue loop unroll factor
_VMEM_LUT_MAX_BYTES = 16 << 20         # table <= 16 MiB -> keep LUT in VMEM
_OUT_TILE_BUDGET = 8 << 20             # VMEM budget for pipelined out blocks
_GATHER_BUDGET = 24 << 20              # VMEM budget for HBM-gather path


def _round_up(x, m):
    return ((x + m - 1) // m) * m


def _pad_ids(ids, t, t_pad):
    if t_pad == t:
        return ids
    return jnp.concatenate([ids, jnp.zeros((t_pad - t,), jnp.int32)])


def _embedding_hbm_kernel(ids_ref, lut_ref, out_ref, buf_ref, sem,
                          *, scale, tile_t, inner):
    """Double-buffered HBM row gather.

    ids_ref : SMEM (T_pad,) int32      -- scalar-prefetched token ids
    lut_ref : HBM  (n_token, d_model)  -- embedding table (memory_space=ANY)
    out_ref : VMEM (tile_t, d_model)   -- output block
    buf_ref : VMEM (2, tile_t, d_model)-- gather landing buffers
    sem     : DMA semaphores, shape (2,)
    """
    o = pl.program_id(0)   # "parallel" outer blocks (megacore-shardable)
    t = pl.program_id(1)   # "arbitrary" inner tiles (carries DMA state)

    def issue_tile(flat_tile, slot):
        base = flat_tile * tile_t

        def chunk(c, carry):
            for u in range(_ISSUE_UNROLL):           # unrolled descriptor pushes
                j = c * _ISSUE_UNROLL + u
                row = ids_ref[base + j]
                pltpu.make_async_copy(
                    lut_ref.at[pl.ds(row, 1)],        # (1, d_model) row in HBM
                    buf_ref.at[slot, pl.ds(j, 1)],    # (1, d_model) slot row
                    sem.at[slot],
                ).start()
            return carry

        lax.fori_loop(0, tile_t // _ISSUE_UNROLL, chunk, None)

    # Prime this outer block's pipeline on its first inner step.
    @pl.when(t == 0)
    def _():
        issue_tile(o * inner, 0)

    slot = lax.rem(t, 2)

    # Prefetch the next inner tile while the current one is in flight.
    @pl.when(t + 1 < inner)
    def _():
        issue_tile(o * inner + t + 1, 1 - slot)

    # Single bulk wait: the DMA semaphore counts bytes, so one wait sized as a
    # full (tile_t, d_model) slot drains all tile_t row copies of this slot.
    pltpu.make_async_copy(buf_ref.at[slot], buf_ref.at[slot], sem.at[slot]).wait()

    # Fused sqrt(d_model) scaling (VPU) while Pallas pipelines the writeback.
    out_ref[...] = (buf_ref[slot] * scale).astype(out_ref.dtype)


def _embedding_vmem_kernel(ids_ref, lut_ref, out_ref, *, scale, tile_t):
    """VMEM-resident LUT fast path: per-row dynamic-slice loads, no DMAs.

    ids_ref : SMEM (T_pad,) int32
    lut_ref : VMEM (n_token, d_model)  -- whole table resident
    out_ref : VMEM (tile_t, d_model)
    """
    base = pl.program_id(0) * tile_t

    def chunk(c, carry):
        for u in range(_ISSUE_UNROLL):
            j = c * _ISSUE_UNROLL + u
            row = ids_ref[base + j]
            out_ref[pl.ds(j, 1), :] = (
                lut_ref[pl.ds(row, 1), :] * scale).astype(out_ref.dtype)
        return carry

    lax.fori_loop(0, tile_t // _ISSUE_UNROLL, chunk, None)


def embeddings_forward(x, lut, *, tile_t=None, force_hbm_gather=False):
    """Returns lut[x] * sqrt(d_model) with shape x.shape + (d_model,)."""
    n_token, d_model = lut.shape
    orig_shape = tuple(x.shape)
    T = int(math.prod(orig_shape)) if orig_shape else 1

    row_bytes = d_model * lut.dtype.itemsize
    lut_bytes = n_token * row_bytes
    scale = float(math.sqrt(d_model))

    use_vmem_lut = (not force_hbm_gather) and (lut_bytes <= _VMEM_LUT_MAX_BYTES)

    # Tile size: biggest lane-dense tile that fits a conservative VMEM budget
    # (safe across v5e's 16 MiB scoped default and v7x's 64 MiB physical).
    if tile_t is None:
        if use_vmem_lut:
            tile_t = _OUT_TILE_BUDGET // (2 * row_bytes)    # 2 pipelined out blocks
        else:
            tile_t = _GATHER_BUDGET // (4 * row_bytes)      # 2 gather bufs + 2 out blocks
    tile_t = int(max(8, min(int(tile_t), 2048, _round_up(T, 8))))
    tile_t = _round_up(tile_t, 8)

    n_tiles = -(-T // tile_t)

    # nn.Embedding raises on OOB ids; here we clamp so gathers never read OOB.
    ids = jnp.clip(x.reshape(-1).astype(jnp.int32), 0, n_token - 1)

    if use_vmem_lut:
        T_pad = n_tiles * tile_t
        ids = _pad_ids(ids, T, T_pad)
        footprint = 2 * lut_bytes + 2 * tile_t * row_bytes
        vmem_limit = int(min(48 << 20, max(32 << 20, footprint + (8 << 20))))

        out_flat = pl.pallas_call(
            functools.partial(_embedding_vmem_kernel, scale=scale, tile_t=tile_t),
            out_shape=jax.ShapeDtypeStruct((T_pad, d_model), lut.dtype),
            grid_spec=pltpu.PrefetchScalarGridSpec(
                num_scalar_prefetch=1,                      # ids -> SMEM
                grid=(n_tiles,),
                in_specs=[
                    # Whole table resident in VMEM (constant block -> fetched once).
                    pl.BlockSpec((n_token, d_model), lambda i, ids_ref: (0, 0)),
                ],
                out_specs=pl.BlockSpec((tile_t, d_model), lambda i, ids_ref: (i, 0)),
            ),
            compiler_params=pltpu.CompilerParams(
                dimension_semantics=("parallel",),
                vmem_limit_bytes=vmem_limit,
            ),
        )(ids, lut)
    else:
        # 2-D grid: outer blocks shard across TensorCores ("parallel"), inner
        # tiles carry the double-buffered DMA state ("arbitrary").
        outer = 2 if n_tiles >= 4 else 1
        inner = -(-n_tiles // outer)
        T_pad = outer * inner * tile_t
        ids = _pad_ids(ids, T, T_pad)
        footprint = 4 * tile_t * row_bytes
        vmem_limit = int(min(48 << 20, max(32 << 20, footprint + (8 << 20))))

        out_flat = pl.pallas_call(
            functools.partial(_embedding_hbm_kernel, scale=scale,
                              tile_t=tile_t, inner=inner),
            out_shape=jax.ShapeDtypeStruct((T_pad, d_model), lut.dtype),
            grid_spec=pltpu.PrefetchScalarGridSpec(
                num_scalar_prefetch=1,                      # ids -> SMEM
                grid=(outer, inner),
                in_specs=[
                    pl.BlockSpec(memory_space=pl.ANY),      # table stays in HBM
                ],
                out_specs=pl.BlockSpec(
                    (tile_t, d_model),
                    lambda o, t, ids_ref: (o * inner + t, 0)),
                scratch_shapes=[
                    pltpu.VMEM((2, tile_t, d_model), lut.dtype),  # gather buffers
                    pltpu.SemaphoreType.DMA((2,)),                # per-slot DMA sems
                ],
            ),
            compiler_params=pltpu.CompilerParams(
                dimension_semantics=("parallel", "arbitrary"),
                vmem_limit_bytes=vmem_limit,
            ),
        )(ids, lut)

    return out_flat[:T].reshape(*orig_shape, d_model)


if __name__ == "__main__":
    # Small, deterministic setup consistent with the module.
    n_token, d_model = 256, 128
    B, S = 2, 8

    key = jax.random.PRNGKey(0)
    k_lut, k_x, k_x2 = jax.random.split(key, 3)

    # nn.Embedding default init is N(0, 1).
    lut = jax.random.normal(k_lut, (n_token, d_model), dtype=jnp.float32)
    x = jax.random.randint(k_x, (B, S), 0, n_token, dtype=jnp.int32)
    ref = lut[x] * math.sqrt(d_model)

    # 1) VMEM-resident LUT fast path (table is small).
    out_vmem = jax.block_until_ready(embeddings_forward(x, lut))
    assert out_vmem.shape == (B, S, d_model)
    assert jnp.allclose(out_vmem, ref, atol=1e-5, rtol=1e-5)

    # 2) HBM DMA-gather path (forced), single tile.
    out_hbm = jax.block_until_ready(
        embeddings_forward(x, lut, force_hbm_gather=True))
    assert jnp.allclose(out_hbm, ref, atol=1e-5, rtol=1e-5)

    # 3) HBM path with many small tiles: exercises the 2-D grid, cross-step
    #    double buffering, slot rotation and tail padding.
    x2 = jax.random.randint(k_x2, (2, 41), 0, n_token, dtype=jnp.int32)
    ref2 = lut[x2] * math.sqrt(d_model)
    out_hbm2 = jax.block_until_ready(
        embeddings_forward(x2, lut, tile_t=8, force_hbm_gather=True))
    assert jnp.allclose(out_hbm2, ref2, atol=1e-5, rtol=1e-5)

    # 4) VMEM path with multiple grid steps.
    out_vmem2 = jax.block_until_ready(embeddings_forward(x2, lut, tile_t=8))
    assert jnp.allclose(out_vmem2, ref2, atol=1e-5, rtol=1e-5)

    print("KERNEL_OK")
</pallas_src>

<mosaic_0001>
module attributes {stable_mosaic.version = 11 : i64} {
  func.func @_embedding_vmem_kernel(%arg0: i32, %arg1: memref<16xi32, #tpu.memory_space<smem>>, %arg2: memref<256x128xf32, #tpu.memory_space<vmem>>, %arg3: memref<16x128xf32, #tpu.memory_space<vmem>>) attributes {dimension_semantics = [#tpu.dimension_semantics<parallel>], iteration_bounds = array<i64: 1>, scalar_prefetch = 1 : i64, scratch_operands = 0 : i64, tpu.core_type = #tpu.core_type<tc>, window_params = [{pipeline_mode = #tpu.pipeline_mode<synchronous>, transform_indices = @transform_0, window_bounds = array<i64: 256, 128>}, {transform_indices = @transform_1, window_bounds = array<i64: 16, 128>}]} {
    %c16_i32 = arith.constant 16 : i32
    %0 = arith.muli %arg0, %c16_i32 : i32
    %c0_i32 = arith.constant 0 : i32
    %c2_i32 = arith.constant 2 : i32
    %1 = arith.addi %c0_i32, %c2_i32 : i32
    %c1_i32 = arith.constant 1 : i32
    scf.for %arg4 = %c0_i32 to %1 step %c1_i32  : i32 {
      %c8_i32 = arith.constant 8 : i32
      %2 = arith.muli %arg4, %c8_i32 : i32
      %c0_i32_1 = arith.constant 0 : i32
      %3 = arith.addi %2, %c0_i32_1 : i32
      %4 = arith.addi %0, %3 : i32
      %5 = arith.index_cast %4 : i32 to index
      %6 = memref.load %arg1[%5] : memref<16xi32, #tpu.memory_space<smem>>
      %7 = arith.index_cast %6 : i32 to index
      %c0 = arith.constant 0 : index
      %8 = vector.load %arg2[%7, %c0] : memref<256x128xf32, #tpu.memory_space<vmem>>, vector<1x128xf32>
      %cst = arith.constant 11.3137083 : f32
      %9 = vector.broadcast %cst : f32 to vector<1x128xf32>
      %10 = arith.mulf %8, %9 : vector<1x128xf32>
      %11 = arith.index_cast %3 : i32 to index
      %c0_2 = arith.constant 0 : index
      %12 = vector.load %arg3[%11, %c0_2] : memref<16x128xf32, #tpu.memory_space<vmem>>, vector<1x128xf32>
      tpu.vector_store %arg3[%11, %c0_2], %10 {strides = array<i32>} : memref<16x128xf32, #tpu.memory_space<vmem>>, vector<1x128xf32>,
      %c8_i32_3 = arith.constant 8 : i32
      %13 = arith.muli %arg4, %c8_i32_3 : i32
      %c1_i32_4 = arith.constant 1 : i32
      %14 = arith.addi %13, %c1_i32_4 : i32
      %15 = arith.addi %0, %14 : i32
      %16 = arith.index_cast %15 : i32 to index
      %17 = memref.load %arg1[%16] : memref<16xi32, #tpu.memory_space<smem>>
      %18 = arith.index_cast %17 : i32 to index
      %c0_5 = arith.constant 0 : index
      %19 = vector.load %arg2[%18, %c0_5] : memref<256x128xf32, #tpu.memory_space<vmem>>, vector<1x128xf32>
      %cst_6 = arith.constant 11.3137083 : f32
      %20 = vector.broadcast %cst_6 : f32 to vector<1x128xf32>
      %21 = arith.mulf %19, %20 : vector<1x128xf32>
      %22 = arith.index_cast %14 : i32 to index
      %c0_7 = arith.constant 0 : index
      %23 = vector.load %arg3[%22, %c0_7] : memref<16x128xf32, #tpu.memory_space<vmem>>, vector<1x128xf32>
      tpu.vector_store %arg3[%22, %c0_7], %21 {strides = array<i32>} : memref<16x128xf32, #tpu.memory_space<vmem>>, vector<1x128xf32>,
      %c8_i32_8 = arith.constant 8 : i32
      %24 = arith.muli %arg4, %c8_i32_8 : i32
      %c2_i32_9 = arith.constant 2 : i32
      %25 = arith.addi %24, %c2_i32_9 : i32
      %26 = arith.addi %0, %25 : i32
      %27 = arith.index_cast %26 : i32 to index
      %28 = memref.load %arg1[%27] : memref<16xi32, #tpu.memory_space<smem>>
      %29 = arith.index_cast %28 : i32 to index
      %c0_10 = arith.constant 0 : index
      %30 = vector.load %arg2[%29, %c0_10] : memref<256x128xf32, #tpu.memory_space<vmem>>, vector<1x128xf32>
      %cst_11 = arith.constant 11.3137083 : f32
      %31 = vector.broadcast %cst_11 : f32 to vector<1x128xf32>
      %32 = arith.mulf %30, %31 : vector<1x128xf32>
      %33 = arith.index_cast %25 : i32 to index
      %c0_12 = arith.constant 0 : index
      %34 = vector.load %arg3[%33, %c0_12] : memref<16x128xf32, #tpu.memory_space<vmem>>, vector<1x128xf32>
      tpu.vector_store %arg3[%33, %c0_12], %32 {strides = array<i32>} : memref<16x128xf32, #tpu.memory_space<vmem>>, vector<1x128xf32>,
      %c8_i32_13 = arith.constant 8 : i32
      %35 = arith.muli %arg4, %c8_i32_13 : i32
      %c3_i32 = arith.constant 3 : i32
      %36 = arith.addi %35, %c3_i32 : i32
      %37 = arith.addi %0, %36 : i32
      %38 = arith.index_cast %37 : i32 to index
      %39 = memref.load %arg1[%38] : memref<16xi32, #tpu.memory_space<smem>>
      %40 = arith.index_cast %39 : i32 to index
      %c0_14 = arith.constant 0 : index
      %41 = vector.load %arg2[%40, %c0_14] : memref<256x128xf32, #tpu.memory_space<vmem>>, vector<1x128xf32>
      %cst_15 = arith.constant 11.3137083 : f32
      %42 = vector.broadcast %cst_15 : f32 to vector<1x128xf32>
      %43 = arith.mulf %41, %42 : vector<1x128xf32>
      %44 = arith.index_cast %36 : i32 to index
      %c0_16 = arith.constant 0 : index
      %45 = vector.load %arg3[%44, %c0_16] : memref<16x128xf32, #tpu.memory_space<vmem>>, vector<1x128xf32>
      tpu.vector_store %arg3[%44, %c0_16], %43 {strides = array<i32>} : memref<16x128xf32, #tpu.memory_space<vmem>>, vector<1x128xf32>,
      %c8_i32_17 = arith.constant 8 : i32
      %46 = arith.muli %arg4, %c8_i32_17 : i32
      %c4_i32 = arith.constant 4 : i32
      %47 = arith.addi %46, %c4_i32 : i32
      %48 = arith.addi %0, %47 : i32
      %49 = arith.index_cast %48 : i32 to index
      %50 = memref.load %arg1[%49] : memref<16xi32, #tpu.memory_space<smem>>
      %51 = arith.index_cast %50 : i32 to index
      %c0_18 = arith.constant 0 : index
      %52 = vector.load %arg2[%51, %c0_18] : memref<256x128xf32, #tpu.memory_space<vmem>>, vector<1x128xf32>
      %cst_19 = arith.constant 11.3137083 : f32
      %53 = vector.broadcast %cst_19 : f32 to vector<1x128xf32>
      %54 = arith.mulf %52, %53 : vector<1x128xf32>
      %55 = arith.index_cast %47 : i32 to index
      %c0_20 = arith.constant 0 : index
      %56 = vector.load %arg3[%55, %c0_20] : memref<16x128xf32, #tpu.memory_space<vmem>>, vector<1x128xf32>
      tpu.vector_store %arg3[%55, %c0_20], %54 {strides = array<i32>} : memref<16x128xf32, #tpu.memory_space<vmem>>, vector<1x128xf32>,
      %c8_i32_21 = arith.constant 8 : i32
      %57 = arith.muli %arg4, %c8_i32_21 : i32
      %c5_i32 = arith.constant 5 : i32
      %58 = arith.addi %57, %c5_i32 : i32
      %59 = arith.addi %0, %58 : i32
      %60 = arith.index_cast %59 : i32 to index
      %61 = memref.load %arg1[%60] : memref<16xi32, #tpu.memory_space<smem>>
      %62 = arith.index_cast %61 : i32 to index
      %c0_22 = arith.constant 0 : index
      %63 = vector.load %arg2[%62, %c0_22] : memref<256x128xf32, #tpu.memory_space<vmem>>, vector<1x128xf32>
      %cst_23 = arith.constant 11.3137083 : f32
      %64 = vector.broadcast %cst_23 : f32 to vector<1x128xf32>
      %65 = arith.mulf %63, %64 : vector<1x128xf32>
      %66 = arith.index_cast %58 : i32 to index
      %c0_24 = arith.constant 0 : index
      %67 = vector.load %arg3[%66, %c0_24] : memref<16x128xf32, #tpu.memory_space<vmem>>, vector<1x128xf32>
      tpu.vector_store %arg3[%66, %c0_24], %65 {strides = array<i32>} : memref<16x128xf32, #tpu.memory_space<vmem>>, vector<1x128xf32>,
      %c8_i32_25 = arith.constant 8 : i32
      %68 = arith.muli %arg4, %c8_i32_25 : i32
      %c6_i32 = arith.constant 6 : i32
      %69 = arith.addi %68, %c6_i32 : i32
      %70 = arith.addi %0, %69 : i32
      %71 = arith.index_cast %70 : i32 to index
      %72 = memref.load %arg1[%71] : memref<16xi32, #tpu.memory_space<smem>>
      %73 = arith.index_cast %72 : i32 to index
      %c0_26 = arith.constant 0 : index
      %74 = vector.load %arg2[%73, %c0_26] : memref<256x128xf32, #tpu.memory_space<vmem>>, vector<1x128xf32>
      %cst_27 = arith.constant 11.3137083 : f32
      %75 = vector.broadcast %cst_27 : f32 to vector<1x128xf32>
      %76 = arith.mulf %74, %75 : vector<1x128xf32>
      %77 = arith.index_cast %69 : i32 to index
      %c0_28 = arith.constant 0 : index
      %78 = vector.load %arg3[%77, %c0_28] : memref<16x128xf32, #tpu.memory_space<vmem>>, vector<1x128xf32>
      tpu.vector_store %arg3[%77, %c0_28], %76 {strides = array<i32>} : memref<16x128xf32, #tpu.memory_space<vmem>>, vector<1x128xf32>,
      %c8_i32_29 = arith.constant 8 : i32
      %79 = arith.muli %arg4, %c8_i32_29 : i32
      %c7_i32 = arith.constant 7 : i32
      %80 = arith.addi %79, %c7_i32 : i32
      %81 = arith.addi %0, %80 : i32
      %82 = arith.index_cast %81 : i32 to index
      %83 = memref.load %arg1[%82] : memref<16xi32, #tpu.memory_space<smem>>
      %84 = arith.index_cast %83 : i32 to index
      %c0_30 = arith.constant 0 : index
      %85 = vector.load %arg2[%84, %c0_30] : memref<256x128xf32, #tpu.memory_space<vmem>>, vector<1x128xf32>
      %cst_31 = arith.constant 11.3137083 : f32
      %86 = vector.broadcast %cst_31 : f32 to vector<1x128xf32>
      %87 = arith.mulf %85, %86 : vector<1x128xf32>
      %88 = arith.index_cast %80 : i32 to index
      %c0_32 = arith.constant 0 : index
      %89 = vector.load %arg3[%88, %c0_32] : memref<16x128xf32, #tpu.memory_space<vmem>>, vector<1x128xf32>
      tpu.vector_store %arg3[%88, %c0_32], %87 {strides = array<i32>} : memref<16x128xf32, #tpu.memory_space<vmem>>, vector<1x128xf32>,
    }
    %c2_i32_0 = arith.constant 2 : i32
    return
  }
  func.func @transform_0(%arg0: i32, %arg1: memref<16xi32, #tpu.memory_space<smem>>) -> (i32, i32) {
    %c0_i32 = arith.constant 0 : i32
    %c0_i32_0 = arith.constant 0 : i32
    %c0_i32_1 = arith.constant 0 : i32
    return %c0_i32, %c0_i32_0 : i32, i32
  }
  func.func @transform_1(%arg0: i32, %arg1: memref<16xi32, #tpu.memory_space<smem>>) -> (i32, i32) {
    %c0_i32 = arith.constant 0 : i32
    %c0_i32_0 = arith.constant 0 : i32
    return %arg0, %c0_i32 : i32, i32
  }
}

</mosaic_0001>

<bundles_post_ra>
// kernel: tpu_custom_call.1
= control target key start
LH: loop header
LB: loop body
LE: loop exit
PB: predicated region body
PF: predicated region fallthrough
CT: control target
= control target key end

     0   :  { %s262_s12 = smov [#allocation3]   ;;  %s306_s0 = inlined_call_operand.hbm [shape: s32[16], index: 0, kind: input, shape index: {}]   ;;  %s307_s1 = inlined_call_operand.hbm [shape: f32[256,128], index: 1, kind: input, shape index: {}]   ;;  %s308_s2 = inlined_call_operand.hbm [shape: f32[16,128], index: 2, kind: output, shape index: {}]  }
   0x1   :  { %s8_s11 = sshll.u32 %s306_s0, 4  ;;  %s9_s11 = int_to_ptr.hbm [resolvable:$true] %s8_s11 }
   0x2   :  { %11 = dma.hbm_to_smem %s9_s11, 16, %s262_s12, [#allocation2] }
   0x3   :  { %252 = dma.done.wait [#allocation2], 16 }
   0x4   :  { %253 = vsyncadd [#allocation2], 4294967280 }
   0x5   :  { %14 = sfence }
   0x6   :  { %15 = vsyncpa [#allocation5], 0 }
   0x7   :  { %16 = vsyncpa [#allocation6], 0  ;;  %s21_s15 = sshll.u32 %s307_s1, 4  ;;  %s263_s16 = smov [#allocation4]   ;;  %s22_s15 = int_to_ptr.hbm [resolvable:$true] %s21_s15 }
   0x8   :  { %s23_s17 = sshll.u32 %s263_s16, 4  ;;  %s264_s18 = smov 128   ;;  %s24_s17 = int_to_ptr.vmem [resolvable:$true] %s23_s17 }
   0x9   :  { %s265_s19 = smov 8  }
   0xa   :  { %29 = dma.hbm_to_vmem [thread:$0]  %s22_s15, 4096, %s24_s17, [#allocation5], %s264_s18, %s264_s18, %s265_s19  }
   0xb   :  { %254 = dma.done.wait [#allocation5], 4096  }
   0xc   :  { %255 = vsyncadd [#allocation5], 4294963200  ;;  %s291_s0 = smov 0  }
   0xd LB: > { %s160_s1 = sshll.u32 %s260_s0, 3  ;;  %s40_s0 = sadd.s32 1, %s260_s0   ;;  %s260_s0 = sphi %s291_s0, %s40_s0  }
   0xe   : > { %s43_s20 = sld [smem:[#allocation3 + %s160_s1]]  ;;  %s49_s21 = sadd.s32 1, %s160_s1 }
   0xf   : > { %s57_s22 = sadd.s32 2, %s160_s1  ;;  %s51_s23 = sld [smem:[#allocation3 + %s49_s21]] }
  0x10   : > { %s65_s24 = sadd.s32 3, %s160_s1  ;;  %s59_s25 = sld [smem:[#allocation3 + %s57_s22]] }
  0x11   : > { %s73_s26 = sadd.s32 4, %s160_s1  ;;  %s67_s27 = sld [smem:[#allocation3 + %s65_s24]] }
  0x12   : > { %s81_s28 = sadd.s32 5, %s160_s1  ;;  %s75_s29 = sld [smem:[#allocation3 + %s73_s26]] }
  0x13   : > { %s89_s30 = sadd.s32 6, %s160_s1  ;;  %s83_s3 = sld [smem:[#allocation3 + %s81_s28]] }
  0x14   : > { %s44_s4 = scalar_lea.vmem [#allocation4], %s43_s20  ;;  %s91_s5 = sld [smem:[#allocation3 + %s89_s30]] }
  0x15   : > { %v45_v0 = vld [vmem:[%s44_s4] sm:$0x1]  ;;  %s97_s6 = sadd.s32 7, %s160_s1  ;;  %s52_s8 = scalar_lea.vmem [#allocation4], %s51_s23 }
  0x16   : > { %v46_v1 = vmul.f32 11.313708, %v45_v0  ;;  %s99_s7 = sld [smem:[#allocation3 + %s97_s6]]  ;;  %v53_v2 = vld [vmem:[%s52_s8] sm:$0x1]  ;;  %s47_s9 = scalar_lea.vmem [#allocation7], %s160_s1 }
  0x17   : > { %v54_v3 = vmul.f32 11.313708, %v53_v2  ;;  %s60_s10 = scalar_lea.vmem [#allocation4], %s59_s25  ;;  %s68_s11 = scalar_lea.vmem [#allocation4], %s67_s27 }
  0x18   : > { %48 = vst [vmem:[%s47_s9] sm:$0x1] %v46_v1  ;;  %v61_v4 = vld [vmem:[%s60_s10] sm:$0x1]  ;;  %s76_s12 = scalar_lea.vmem [#allocation4], %s75_s29  ;;  %p37_p0 = scmp.ge.s32.totalorder %s40_s0, 2  }
  0x19   : > { %v62_v5 = vmul.f32 11.313708, %v61_v4  ;;  %v69_v6 = vld [vmem:[%s68_s11] sm:$0x1]  ;;  %162 = vst [vmem:[%s47_s9 + $0x1] sm:$0x1] %v54_v3 }
  0x1a   : > { %v70_v7 = vmul.f32 11.313708, %v69_v6  ;;  %v77_v8 = vld [vmem:[%s76_s12] sm:$0x1]  ;;  %s84_s13 = scalar_lea.vmem [#allocation4], %s83_s3  ;;  %s92_s14 = scalar_lea.vmem [#allocation4], %s91_s5 }
  0x1b   : > { %164 = vst [vmem:[%s47_s9 + $0x2] sm:$0x1] %v62_v5  ;;  %v78_v9 = vmul.f32 11.313708, %v77_v8  ;;  %v85_v10 = vld [vmem:[%s84_s13] sm:$0x1] }
  0x1c   : > { %166 = vst [vmem:[%s47_s9 + $0x3] sm:$0x1] %v70_v7  ;;  %v93_v11 = vld [vmem:[%s92_s14] sm:$0x1]  ;;  %v86_v12 = vmul.f32 11.313708, %v85_v10 }
  0x1d   : > { %168 = vst [vmem:[%s47_s9 + $0x4] sm:$0x1] %v78_v9  ;;  %v94_v13 = vmul.f32 11.313708, %v93_v11  ;;  %s100_s15 = scalar_lea.vmem [#allocation4], %s99_s7  ;;  %39 = sbr.rel (!%p37_p0) target bundleno = 13 (0xd), region = 51 }
  0x1e   : > { %170 = vst [vmem:[%s47_s9 + $0x5] sm:$0x1] %v86_v12  ;;  %v101_v14 = vld [vmem:[%s100_s15] sm:$0x1]  ;;  %s111_s1 = sshll.u32 (%p37_p0), %s308_s2, 4  ;;  %s266_s20 = smov (%p37_p0), [#allocation7]   ;;  %s112_s1 = int_to_ptr.hbm [resolvable:$true] %s111_s1 }
  0x1f   : > { %172 = vst [vmem:[%s47_s9 + $0x6] sm:$0x1] %v94_v13  ;;  %v102_v15 = vmul.f32 11.313708, %v101_v14  ;;  %s109_s21 = sshll.u32 (%p37_p0), %s266_s20, 4  ;;  %s110_s21 = int_to_ptr.vmem [resolvable:$true] %s109_s21 }
  0x21   : > { %174 = vst [vmem:[%s47_s9 + $0x7] sm:$0x1] %v102_v15 }
  0x22   :  { %117 = dma.vmem_to_hbm [thread:$0]  %s110_s21, 256, %s112_s1, [#allocation6], %s264_s18, %s264_s18, %s265_s19  }
  0x23   :  { %256 = dma.done.wait [#allocation6], 256  }
  0x24   :  { %257 = vsyncadd [#allocation6], 4294967040 }
  0x25   :  { %122 = vsyncpa [#allocation5], 1 }
  0x26   :  { %123 = vsyncpa [#allocation6], 1 }

</bundles_post_ra>
